<compile_context>
chip_gen: v5e
topology: v5e:2x2
jax: 0.10.0
libtpu: 0.0.40
codegen_flags: <defaults>
</compile_context>

<pallas_src>
import functools

import jax
import jax.numpy as jnp
from jax.experimental import pallas as pl
from jax.experimental.pallas import tpu as pltpu


def _layernorm_kernel(alpha_ref, bias_ref, x_ref, o_ref, *, eps):
    # alpha_ref/bias_ref: (1,) scalars in SMEM; x_ref/o_ref: (block_rows, D) in VMEM
    x = x_ref[...].astype(jnp.float32)
    d = x.shape[-1]
    mean = jnp.mean(x, axis=-1, keepdims=True)
    xc = x - mean
    # torch.std default is unbiased (ddof=1), and eps is added to std (not var)
    var = jnp.sum(xc * xc, axis=-1, keepdims=True) / jnp.float32(d - 1)
    std = jnp.sqrt(var)
    # Per-row reciprocal-and-scale instead of a full-tile divide (exact recip to
    # keep the 1e-5 tolerance; flip to approx=True only if tolerance allows).
    scale = alpha_ref[0] * pl.reciprocal(std + jnp.float32(eps), approx=False)
    o_ref[...] = (xc * scale + bias_ref[0]).astype(o_ref.dtype)


def _round_up(v, m):
    return ((v + m - 1) // m) * m


def layer_normalization(x, alpha, bias, *, eps=1e-6, block_rows=None):
    """Pallas TPU LayerNormalization matching the PyTorch module semantics."""
    orig_shape = x.shape
    d = orig_shape[-1]
    x2 = x.reshape(-1, d)
    n = x2.shape[0]

    # Sublane packing per dtype (f32 -> 8, bf16 -> 16, int8/fp8 -> 32 rows/vreg).
    itemsize = jnp.dtype(x.dtype).itemsize
    packing = {4: 8, 2: 16, 1: 32}.get(itemsize, 8)

    if block_rows is None:
        # Largest row tile that keeps double-buffered in+out tiles comfortably
        # under the smallest scoped-VMEM default across generations (~16 MiB on
        # v5e): budget ~8 MiB, assuming f32-width traffic worst case.
        budget_bytes = 8 * 1024 * 1024
        bytes_per_row = d * 4 * 2 * 2  # (in + out) x 2 pipeline buffers, f32
        block_rows = max(packing, budget_bytes // max(bytes_per_row, 1))
        block_rows = min(block_rows, 1024)

    block_rows = max(packing, _round_up(block_rows, packing))
    # Never tile larger than the (packing-rounded) row count.
    block_rows = min(block_rows, _round_up(n, packing))

    # Pad rows to a tile multiple instead of requiring exact divisibility.
    n_padded = _round_up(n, block_rows)
    if n_padded != n:
        x2 = jnp.pad(x2, ((0, n_padded - n), (0, 0)))

    grid = (n_padded // block_rows,)

    out = pl.pallas_call(
        functools.partial(_layernorm_kernel, eps=eps),
        out_shape=jax.ShapeDtypeStruct((n_padded, d), x.dtype),
        grid=grid,
        in_specs=[
            pl.BlockSpec(memory_space=pltpu.MemorySpace.SMEM),  # alpha (1,)
            pl.BlockSpec(memory_space=pltpu.MemorySpace.SMEM),  # bias  (1,)
            pl.BlockSpec((block_rows, d), lambda i: (i, 0)),
        ],
        out_specs=pl.BlockSpec((block_rows, d), lambda i: (i, 0)),
        compiler_params=pltpu.CompilerParams(dimension_semantics=("parallel",)),
    )(alpha, bias, x2)

    if n_padded != n:
        out = out[:n]
    return out.reshape(orig_shape)


def _reference(x, alpha, bias, eps=1e-6):
    x32 = x.astype(jnp.float32)
    mean = jnp.mean(x32, axis=-1, keepdims=True)
    std = jnp.std(x32, axis=-1, keepdims=True, ddof=1)  # torch unbiased std
    return (alpha[0] * (x32 - mean) / (std + eps) + bias[0]).astype(x.dtype)


if __name__ == "__main__":
    key = jax.random.PRNGKey(0)
    # batch=2, seq=8, hidden=128 (lane-dense last dim)
    x = jax.random.normal(key, (2, 8, 128), dtype=jnp.float32)

    # Deterministic parameter init matching nn.Parameter(torch.ones(1)) / zeros(1)
    alpha = jnp.ones((1,), dtype=jnp.float32)
    bias = jnp.zeros((1,), dtype=jnp.float32)

    out = layer_normalization(x, alpha, bias, eps=1e-6)
    jax.block_until_ready(out)

    ref = _reference(x, alpha, bias, eps=1e-6)
    assert out.shape == x.shape and out.dtype == x.dtype
    assert jnp.allclose(out, ref, atol=1e-5, rtol=1e-5), "mismatch vs reference"

    print("KERNEL_OK")
</pallas_src>

<mosaic_0001>
module attributes {stable_mosaic.version = 11 : i64} {
  func.func @_layernorm_kernel(%arg0: i32, %arg1: memref<1xf32, #tpu.memory_space<smem>>, %arg2: memref<1xf32, #tpu.memory_space<smem>>, %arg3: memref<16x128xf32, #tpu.memory_space<vmem>>, %arg4: memref<16x128xf32, #tpu.memory_space<vmem>>) attributes {dimension_semantics = [#tpu.dimension_semantics<parallel>], iteration_bounds = array<i64: 1>, scalar_prefetch = 0 : i64, scratch_operands = 0 : i64, tpu.core_type = #tpu.core_type<tc>, window_params = [{transform_indices = @transform_0, window_bounds = array<i64: 1>}, {transform_indices = @transform_1, window_bounds = array<i64: 1>}, {transform_indices = @transform_2, window_bounds = array<i64: 16, 128>}, {transform_indices = @transform_3, window_bounds = array<i64: 16, 128>}]} {
    %c0 = arith.constant 0 : index
    %c0_0 = arith.constant 0 : index
    %0 = vector.load %arg3[%c0, %c0_0] : memref<16x128xf32, #tpu.memory_space<vmem>>, vector<16x128xf32>
    %cst = arith.constant dense<0.000000e+00> : vector<16xf32>
    %1 = vector.multi_reduction <add>, %0, %cst [1] : vector<16x128xf32> to vector<16xf32>
    %2 = vector.shape_cast %1 : vector<16xf32> to vector<16x1xf32>
    %cst_1 = arith.constant 1.280000e+02 : f32
    %3 = vector.broadcast %cst_1 : f32 to vector<16x1xf32>
    %4 = arith.divf %2, %3 : vector<16x1xf32>
    %5 = vector.broadcast %4 : vector<16x1xf32> to vector<16x128xf32>
    %6 = arith.subf %0, %5 : vector<16x128xf32>
    %7 = arith.mulf %6, %6 : vector<16x128xf32>
    %cst_2 = arith.constant dense<0.000000e+00> : vector<16xf32>
    %8 = vector.multi_reduction <add>, %7, %cst_2 [1] : vector<16x128xf32> to vector<16xf32>
    %9 = vector.shape_cast %8 : vector<16xf32> to vector<16x1xf32>
    %cst_3 = arith.constant 1.270000e+02 : f32
    %10 = vector.broadcast %cst_3 : f32 to vector<16x1xf32>
    %11 = arith.divf %9, %10 : vector<16x1xf32>
    %12 = math.sqrt %11 : vector<16x1xf32>
    %c0_4 = arith.constant 0 : index
    %13 = memref.load %arg1[%c0_4] : memref<1xf32, #tpu.memory_space<smem>>
    %cst_5 = arith.constant 9.99999997E-7 : f32
    %14 = vector.broadcast %cst_5 : f32 to vector<16x1xf32>
    %15 = arith.addf %12, %14 : vector<16x1xf32>
    %16 = tpu.reciprocal %15 : vector<16x1xf32> -> vector<16x1xf32>
    %17 = vector.broadcast %13 : f32 to vector<16x1xf32>
    %18 = arith.mulf %17, %16 : vector<16x1xf32>
    %19 = vector.broadcast %18 : vector<16x1xf32> to vector<16x128xf32>
    %20 = arith.mulf %6, %19 : vector<16x128xf32>
    %c0_6 = arith.constant 0 : index
    %21 = memref.load %arg2[%c0_6] : memref<1xf32, #tpu.memory_space<smem>>
    %22 = vector.broadcast %21 : f32 to vector<16x128xf32>
    %23 = arith.addf %20, %22 : vector<16x128xf32>
    %c0_7 = arith.constant 0 : index
    %c0_8 = arith.constant 0 : index
    %24 = vector.load %arg4[%c0_7, %c0_8] : memref<16x128xf32, #tpu.memory_space<vmem>>, vector<16x128xf32>
    tpu.vector_store %arg4[%c0_7, %c0_8], %23 {strides = array<i32>} : memref<16x128xf32, #tpu.memory_space<vmem>>, vector<16x128xf32>,
    return
  }
  func.func @transform_0(%arg0: i32) -> i32 {
    %c0_i32 = arith.constant 0 : i32
    %c0_i32_0 = arith.constant 0 : i32
    return %c0_i32 : i32
  }
  func.func @transform_1(%arg0: i32) -> i32 {
    %c0_i32 = arith.constant 0 : i32
    %c0_i32_0 = arith.constant 0 : i32
    return %c0_i32 : i32
  }
  func.func @transform_2(%arg0: i32) -> (i32, i32) {
    %c0_i32 = arith.constant 0 : i32
    %c0_i32_0 = arith.constant 0 : i32
    return %arg0, %c0_i32 : i32, i32
  }
  func.func @transform_3(%arg0: i32) -> (i32, i32) {
    %c0_i32 = arith.constant 0 : i32
    %c0_i32_0 = arith.constant 0 : i32
    return %arg0, %c0_i32 : i32, i32
  }
}

</mosaic_0001>

<bundles_post_ra>
// kernel: tpu_custom_call.1
= control target key start
LH: loop header
LB: loop body
LE: loop exit
PB: predicated region body
PF: predicated region fallthrough
CT: control target
= control target key end

     0   :  { %10 = vsyncpa [#allocation5], 0  ;;  %s274_s0 = inlined_call_operand.<no memory space> [shape: f32[1], index: 0, kind: input, shape index: {}]   ;;  %s275_s1 = inlined_call_operand.<no memory space> [shape: f32[1], index: 1, kind: input, shape index: {}]   ;;  %s276_s2 = inlined_call_operand.hbm [shape: f32[16,128], index: 2, kind: input, shape index: {}]   ;;  %s277_s3 = inlined_call_operand.hbm [shape: f32[16,128], index: 3, kind: output, shape index: {}]  }
   0x1   :  { %11 = vsyncpa [#allocation6], 0  ;;  %s20_s14 = sshll.u32 %s276_s2, 4  ;;  %s220_s15 = smov [#allocation4]   ;;  %s21_s14 = int_to_ptr.hbm [resolvable:$true] %s20_s14 }
   0x2   :  { %s22_s16 = sshll.u32 %s220_s15, 4  ;;  %s221_s17 = smov 128   ;;  %s23_s16 = int_to_ptr.vmem [resolvable:$true] %s22_s16 }
   0x3   :  { %s222_s18 = smov 8  }
   0x4   :  { %28 = dma.hbm_to_vmem [thread:$0]  %s21_s14, 256, %s23_s16, [#allocation5], %s221_s17, %s221_s17, %s222_s18  }
   0x5   :  { %216 = dma.done.wait [#allocation5], 256  }
   0x6   :  { %217 = vsyncadd [#allocation5], 4294967040  ;;  %v33_v0 = vld [vmem:[#allocation4] sm:$0xff]  ;;  %v34_v1 = vld [vmem:[#allocation4 + $0x8] sm:$0xff]  ;;  %v223_v2 = vmov 128.0   ;;  %v224_v17 = vmov 127.0   ;;  %v120_v59 = vstv %s274_s0 }
   0x7   :  { %35 = vadd.xlane.f32.xlu0 %v33_v0  ;;  %156 = vrcp.f32 %v223_v2  ;;  %v126_v2 = vstv %s275_s1  ;;  %s225_s0 = smov [#allocation7]   ;;  %s137_s1 = sshll.u32 %s277_s3, 4  ;;  %s138_s1 = int_to_ptr.hbm [resolvable:$true] %s137_s1 }
   0x8   :  { %158 = vrcp.f32 %v224_v17  ;;  %s135_s22 = sshll.u32 %s225_s0, 4  ;;  %s136_s22 = int_to_ptr.vmem [resolvable:$true] %s135_s22 }
   0xd   :  { %v157_v3 = vpop.eup %156 }
   0xe   :  { %v40_v4 = vmul.f32 128.0, %v157_v3  ;;  %vm44_vm0 = vweird.f32 %v157_v3  ;;  %v159_v18 = vpop.eup %158 }
   0xf   :  { %37 = vadd.xlane.f32.xlu0 %v34_v1  ;;  %v57_v19 = vmul.f32 127.0, %v159_v18  ;;  %vm61_vm1 = vweird.f32 %v159_v18 }
  0x10   :  { %v41_v5 = vsub.f32 1.0, %v40_v4 }
  0x11   :  { %v58_v20 = vsub.f32 1.0, %v57_v19 }
  0x12   :  { %v42_v6 = vmul.f32 %v157_v3, %v41_v5 }
  0x13   :  { %v59_v21 = vmul.f32 %v159_v18, %v58_v20 }
  0x14   :  { %v43_v7 = vadd.f32 %v157_v3, %v42_v6 }
  0x15   :  { %v60_v22 = vadd.f32 %v159_v18, %v59_v21 }
  0x16   :  { %v45_v8 = vsel %vm44_vm0, %v157_v3, %v43_v7 }
  0x17   :  { %v62_v23 = vsel %vm61_vm1, %v159_v18, %v60_v22 }
  0x7a   :  { %v36_v9 = vpop.xlane.xlu0 %35 }
  0x7b   :  { %v46_v10 = vmul.f32 %v45_v8, %v36_v9 }
  0x7d   :  { %v252_v11 = vsub.f32 %v33_v0, %v46_v10 }
  0x7f   :  { %v50_v12 = vmul.f32 %v252_v11, %v252_v11 }
  0x81   :  { %52 = vadd.xlane.f32.xlu1 %v50_v12 }
  0x82   :  { %v38_v13 = vpop.xlane.xlu0 %37 }
  0x83   :  { %v47_v14 = vmul.f32 %v45_v8, %v38_v13 }
  0x85   :  { %v256_v15 = vsub.f32 %v34_v1, %v47_v14 }
  0x87   :  { %v51_v16 = vmul.f32 %v256_v15, %v256_v15 }
  0x89   :  { %54 = vadd.xlane.f32.xlu1 %v51_v16 }
  0xf4   :  { %v53_v24 = vpop.xlane.xlu1 %52 }
  0xf5   :  { %v63_v25 = vmul.f32 %v62_v23, %v53_v24 }
  0xf7   :  { %160 = vrsqrt.f32 %v63_v25  ;;  %vm72_vm2 = vcmp.eq.f32.partialorder %v63_v25, inf  ;;  %v75_v38 = vand.u32 2147483648, %v63_v25  ;;  %vm74_vm3 = vcmp.eq.f32.partialorder %v63_v25, 0.0 }
  0xfc   :  { %v55_v26 = vpop.xlane.xlu1 %54 }
  0xfd   :  { %v161_v27 = vpop.eup %160  ;;  %v64_v28 = vmul.f32 %v62_v23, %v55_v26 }
  0xfe   :  { %v66_v29 = vmul.f32 %v161_v27, %v63_v25 }
  0xff   :  { %162 = vrsqrt.f32 %v64_v28  ;;  %vm84_vm4 = vcmp.eq.f32.partialorder %v64_v28, inf  ;;  %v87_v46 = vand.u32 2147483648, %v64_v28  ;;  %vm86_vm5 = vcmp.eq.f32.partialorder %v64_v28, 0.0 }
 0x100   :  { %v67_v30 = vmul.f32 %v161_v27, %v66_v29 }
 0x102   :  { %v68_v31 = vmul.f32 0.5, %v67_v30 }
 0x104   :  { %v69_v32 = vsub.f32 1.5, %v68_v31 }
 0x105   :  { %v163_v33 = vpop.eup %162 }
 0x106   :  { %v70_v34 = vmul.f32 %v161_v27, %v69_v32  ;;  %v78_v35 = vmul.f32 %v163_v33, %v64_v28 }
 0x108   :  { %v71_v36 = vmul.f32 %v70_v34, %v63_v25  ;;  %v79_v37 = vmul.f32 %v163_v33, %v78_v35 }
 0x10a   :  { %v73_v39 = vsel %vm72_vm2, %v63_v25, %v71_v36  ;;  %v80_v40 = vmul.f32 0.5, %v79_v37 }
 0x10b   :  { %v76_v41 = vsel %vm74_vm3, %v75_v38, %v73_v39 }
 0x10c   :  { %v90_v42 = vadd.f32 1e-06, %v76_v41  ;;  %v81_v43 = vsub.f32 1.5, %v80_v40 }
 0x10e   :  { %164 = vrcp.f32 %v90_v42  ;;  %v82_v44 = vmul.f32 %v163_v33, %v81_v43  ;;  %v103_v53 = vand.u32 2147483648, %v90_v42  ;;  %v101_v55 = vand.u32 2147483647, %v90_v42 }
 0x10f   :  { %vm97_vm7 = vweird.f32 %v90_v42 }
 0x110   :  { %v83_v45 = vmul.f32 %v82_v44, %v64_v28  ;;  %v104_v58 = vor.u32 1.1754944e-38, %v103_v53  ;;  %vm102_vm9 = vcmp.eq.f32.partialorder %v101_v55, 8.507059e+37 }
 0x112   :  { %v85_v47 = vsel %vm84_vm4, %v64_v28, %v83_v45 }
 0x113   :  { %v88_v48 = vsel %vm86_vm5, %v87_v46, %v85_v47 }
 0x114   :  { %v165_v49 = vpop.eup %164  ;;  %v91_v50 = vadd.f32 1e-06, %v88_v48 }
 0x115   :  { %v93_v51 = vmul.f32 %v165_v49, %v90_v42  ;;  %vm98_vm6 = vweird.f32 %v165_v49 }
 0x116   :  { %166 = vrcp.f32 %v91_v50  ;;  %vm99_vm8 = vmor %vm97_vm7, %vm98_vm6  ;;  %v117_v1 = vand.u32 2147483648, %v91_v50  ;;  %v115_v4 = vand.u32 2147483647, %v91_v50  ;;  %vm111_vm11 = vweird.f32 %v91_v50 }
 0x117   :  { %v94_v52 = vsub.f32 1.0, %v93_v51 }
 0x118   :  { %v118_v8 = vor.u32 1.1754944e-38, %v117_v1  ;;  %vm116_vm13 = vcmp.eq.f32.partialorder %v115_v4, 8.507059e+37 }
 0x119   :  { %v95_v54 = vmul.f32 %v165_v49, %v94_v52 }
 0x11b   :  { %v96_v56 = vadd.f32 %v165_v49, %v95_v54 }
 0x11c   :  { %v167_v57 = vpop.eup %166 }
 0x11d   :  { %v100_v60 = vsel %vm99_vm8, %v165_v49, %v96_v56  ;;  %v107_v61 = vmul.f32 %v167_v57, %v91_v50  ;;  %vm112_vm10 = vweird.f32 %v167_v57 }
 0x11e   :  { %v105_v62 = vsel %vm102_vm9, %v104_v58, %v100_v60  ;;  %vm113_vm12 = vmor %vm111_vm11, %vm112_vm10 }
 0x11f   :  { %v108_v63 = vsub.f32 1.0, %v107_v61  ;;  %v121_v0 = vmul.f32 %v120_v59, %v105_v62 }
 0x121   :  { %v109_v3 = vmul.f32 %v167_v57, %v108_v63  ;;  %v123_v5 = vmul.f32 %v121_v0, %v252_v11 }
 0x123   :  { %v110_v6 = vadd.f32 %v167_v57, %v109_v3  ;;  %v127_v7 = vadd.f32 %v126_v2, %v123_v5 }
 0x125   :  { %v114_v9 = vsel %vm113_vm12, %v167_v57, %v110_v6  ;;  %129 = vst [vmem:[#allocation7] sm:$0xff] %v127_v7 }
 0x126   :  { %v119_v10 = vsel %vm116_vm13, %v118_v8, %v114_v9 }
 0x127   :  { %v122_v12 = vmul.f32 %v120_v59, %v119_v10 }
 0x129   :  { %v124_v13 = vmul.f32 %v122_v12, %v256_v15 }
 0x12b   :  { %v128_v14 = vadd.f32 %v126_v2, %v124_v13 }
 0x12d   :  { %130 = vst [vmem:[#allocation7 + $0x8] sm:$0xff] %v128_v14 }
 0x12e   :  { %143 = dma.vmem_to_hbm [thread:$0]  %s136_s22, 256, %s138_s1, [#allocation6], %s221_s17, %s221_s17, %s222_s18  }
 0x12f   :  { %218 = dma.done.wait [#allocation6], 256  }
 0x130   :  { %219 = vsyncadd [#allocation6], 4294967040 }
 0x131   :  { %148 = vsyncpa [#allocation5], 1 }
 0x132   :  { %149 = vsyncpa [#allocation6], 1 }

</bundles_post_ra>
